<compile_context>
chip_gen: v7x
topology: tpu7x:2x2x1
jax: 0.10.0
libtpu: 0.0.40
codegen_flags: <defaults>
</compile_context>

<pallas_src>
import jax
import jax.numpy as jnp
from jax.experimental import pallas as pl
from jax.experimental.pallas import tpu as pltpu


def _trend_kernel(x_ref, slab_ref, out_ref):
    """Full LSTM recurrence + fc + sigmoid in a single program (no grid).

    x_ref:    [B, T, F]        batch_first input, unmodified
    slab_ref: [F_pad+H+8, 4H]  packed f32 params, gate order (i, f, o, g),
                               g-gate columns pre-scaled by 2 (see pack_params)
    out_ref:  [B, 4H]          sigmoid(fc(h_T)) broadcast across lanes (col 0 real)
    """
    B, T, F = x_ref.shape
    four_h = slab_ref.shape[1]
    H = four_h // 4
    f_pad = slab_ref.shape[0] - H - 8

    # ---- one-time parameter loads (single slab => single input DMA) ----
    w_ih = slab_ref[0:F, :].astype(jnp.bfloat16)               # [F, 4H]
    w_hh = slab_ref[f_pad:f_pad + H, :].astype(jnp.bfloat16)   # [H, 4H]
    tail = slab_ref[f_pad + H:f_pad + H + 8, :]                # aligned [8, 4H] block
    b_gates = tail[0:1, :]                                     # [1, 4H]  (i,f,o, 2*g)
    w_fc_row = tail[1:2, :H]                                   # [1, H]
    b_fc_row = tail[2:3, :]                                    # [1, 4H]  (b_fc on all lanes)

    # ---- hoisted input projection: ONE wide MXU matmul for all timesteps ----
    x2d = x_ref[...].reshape(B * T, F).astype(jnp.bfloat16)    # row = b*T + t
    xw = jnp.dot(x2d, w_ih, preferred_element_type=jnp.float32) + b_gates   # [B*T,4H] f32
    xw = xw.reshape(B, T, four_h)
    # NOTE: with B < 8, xw[:, t, :] is a 2-row sublane select per step; if B grows,
    # pad B to 8 and use a time-major [T, 8, 4H] view so each step reads one aligned tile.

    # PyTorch default h0 = c0 = 0; state stays in vector registers (no scratch round trip).
    h = jnp.zeros((B, H), jnp.float32)
    c = jnp.zeros((B, H), jnp.float32)

    # Fully unrolled: T is static & small.  Per-step serial path = one [B,H]x[H,4H]
    # bf16 matmul + 2 EUP pushes (sigmoid over all gates, tanh(c)) + VPU ops.
    # TODO(synk): switch to lax.fori_loop(..., unroll=2..4) over a [T, B_pad, 4H]
    #             view if T grows (bounds live ranges / code size).
    # TODO(synk): keep W_hh resident in the MXU across steps via
    #             pltpu.matmul_push_rhs / matmul_acc_lhs / matmul_pop; skipped because
    #             accumulator-reset semantics differ between the MRF (v5e/v6e) and
    #             MRB (v7x) result paths and a wrong guess is silently incorrect;
    #             the per-step bf16 dot below is already near the latency floor.
    for t in range(T):
        pre = xw[:, t, :] + jnp.dot(h.astype(jnp.bfloat16), w_hh,
                                    preferred_element_type=jnp.float32)    # [B, 4H]
        s = jax.nn.sigmoid(pre)               # single EUP push covering all four gates
        i_g = s[:, 0:H]
        f_g = s[:, H:2 * H]
        o_g = s[:, 2 * H:3 * H]
        g_g = 2.0 * s[:, 3 * H:] - 1.0        # == tanh(z): g columns were pre-scaled by 2
        c = f_g * c + i_g * g_g
        h = o_g * jnp.tanh(c)                 # the one unavoidable extra EUP push

    # ---- Dropout(0.1) in eval mode == identity ----
    # TODO(synk): training-mode dropout would need pltpu.prng_seed / prng_random_bits.
    # ---- fc(H -> 1) on VPU + one cross-lane (XLU) reduction; no tail MXU matmul ----
    logit = jnp.sum(h * w_fc_row, axis=-1, keepdims=True)      # [B, 1] f32
    out_ref[...] = jax.nn.sigmoid(logit + b_fc_row)            # lane-dense [B, 4H] store


@jax.jit
def trend_predictor_forward(x, slab):
    """x: [B, T, F] (batch_first, like PyTorch). slab: packed params. Returns [B, 1]."""
    B = x.shape[0]
    four_h = slab.shape[1]
    vmem = pl.BlockSpec(memory_space=pltpu.MemorySpace.VMEM)
    out = pl.pallas_call(
        _trend_kernel,
        out_shape=jax.ShapeDtypeStruct((B, four_h), jnp.float32),
        in_specs=[vmem, vmem],
        out_specs=vmem,
        # Grid-less single program: at B=2 there is nothing to shard across cores.
        # TODO(synk): if batch scales, add a batch grid with
        #   compiler_params=pltpu.CompilerParams(dimension_semantics=("parallel",))
        #   (uses v7x's 2nd TensorCore) and chunk the hoisted projection over T with
        #   Buffered(2) BlockSpecs so xw is never fully VMEM-resident (v7x: 64 MiB).
    )(x, slab)
    return out[:, :1]


def init_pt_params(key, num_features, hidden_size):
    """PyTorch-layout parameters, U(-1/sqrt(H), 1/sqrt(H)) like nn.LSTM / nn.Linear.

    weight_ih [4H,F], weight_hh [4H,H], bias_ih/bias_hh [4H] in gate order (i, f, g, o);
    fc_weight [1,H], fc_bias [1].
    """
    H, F = hidden_size, num_features
    k = 1.0 / jnp.sqrt(jnp.float32(H))
    ks = jax.random.split(key, 6)
    return dict(
        weight_ih=jax.random.uniform(ks[0], (4 * H, F), jnp.float32, -k, k),
        weight_hh=jax.random.uniform(ks[1], (4 * H, H), jnp.float32, -k, k),
        bias_ih=jax.random.uniform(ks[2], (4 * H,), jnp.float32, -k, k),
        bias_hh=jax.random.uniform(ks[3], (4 * H,), jnp.float32, -k, k),
        fc_weight=jax.random.uniform(ks[4], (1, H), jnp.float32, -k, k),
        fc_bias=jax.random.uniform(ks[5], (1,), jnp.float32, -k, k),
    )


def pack_params(pt):
    """Pack PyTorch-layout params into one sublane-aligned f32 slab (one input DMA).

    Slab (width 4H lanes, gate order i | f | o | g, g columns pre-scaled by 2):
      rows [0, F)            : W_ih^T
      rows [F, F_pad)        : zero padding (F_pad = round_up(F, 8))
      rows [F_pad, F_pad+H)  : W_hh^T
      row  F_pad+H           : b_ih + b_hh
      row  F_pad+H+1         : fc weight in lanes [0, H)
      row  F_pad+H+2         : fc bias broadcast across all lanes
      rows ... F_pad+H+8     : zero padding (total rows multiple of 8)
    """
    four_h, F = pt["weight_ih"].shape
    H = four_h // 4
    assert H % 8 == 0, "H should be a multiple of 8 (H=32 gives lane-dense 4H=128)"
    f_pad = max(8, ((F + 7) // 8) * 8)

    def fuse(w_pt):  # [4H, in] (i,f,g,o) -> [in, 4H] (i,f,o,g), g block pre-scaled by 2
        gi, gf, gg, go = jnp.split(w_pt, 4, axis=0)
        return jnp.concatenate([gi.T, gf.T, go.T, 2.0 * gg.T], axis=1)

    w_ih = fuse(pt["weight_ih"])                               # [F, 4H]
    w_hh = fuse(pt["weight_hh"])                               # [H, 4H]
    b = pt["bias_ih"] + pt["bias_hh"]
    bi, bf_, bg, bo = jnp.split(b, 4)
    b_gates = jnp.concatenate([bi, bf_, bo, 2.0 * bg])         # [4H]

    rows = f_pad + H + 8
    slab = jnp.zeros((rows, four_h), jnp.float32)
    slab = slab.at[0:F, :].set(w_ih)
    slab = slab.at[f_pad:f_pad + H, :].set(w_hh)
    slab = slab.at[f_pad + H, :].set(b_gates)
    slab = slab.at[f_pad + H + 1, 0:H].set(pt["fc_weight"][0])
    slab = slab.at[f_pad + H + 2, :].set(pt["fc_bias"][0])
    return slab


def reference_forward(x, pt):
    """Pure-JAX f32 reference of the PyTorch module, using PyTorch-layout weights
    (gate order i, f, g, o) — validates the packing/permutation path end to end."""
    B, T, F = x.shape
    H = pt["weight_hh"].shape[1]
    w_ih, w_hh = pt["weight_ih"], pt["weight_hh"]
    b = pt["bias_ih"] + pt["bias_hh"]
    h = jnp.zeros((B, H), jnp.float32)
    c = jnp.zeros((B, H), jnp.float32)
    for t in range(T):
        gates = x[:, t, :] @ w_ih.T + h @ w_hh.T + b           # [B, 4H] (i, f, g, o)
        i_g = jax.nn.sigmoid(gates[:, 0:H])
        f_g = jax.nn.sigmoid(gates[:, H:2 * H])
        g_g = jnp.tanh(gates[:, 2 * H:3 * H])
        o_g = jax.nn.sigmoid(gates[:, 3 * H:])
        c = f_g * c + i_g * g_g
        h = o_g * jnp.tanh(c)
    # Dropout(0.1) eval mode == identity; last timestep's hidden state -> fc -> sigmoid.
    return jax.nn.sigmoid(h @ pt["fc_weight"].T + pt["fc_bias"])


if __name__ == "__main__":
    B, T, F, H = 2, 8, 4, 32          # batch, seq_len, num_features, hidden_size

    key = jax.random.PRNGKey(0)
    k_x, k_p = jax.random.split(key)
    x = jax.random.normal(k_x, (B, T, F), jnp.float32)
    pt_params = init_pt_params(k_p, F, H)
    slab = pack_params(pt_params)

    out = jax.block_until_ready(trend_predictor_forward(x, slab))
    assert out.shape == (B, 1)

    ref = reference_forward(x, pt_params)
    # bf16 MXU operands in the kernel (f32 accumulate/state/EUP) -> relaxed tolerance
    # vs. the pure-f32 PyTorch-semantics reference.
    assert jnp.allclose(out, ref, atol=2e-2, rtol=0.0), (out, ref)

    print("KERNEL_OK")
</pallas_src>

<mosaic_0001>
module attributes {stable_mosaic.version = 11 : i64} {
  func.func @_trend_kernel(%arg0: memref<2x8x4xf32, #tpu.memory_space<vmem>>, %arg1: memref<48x128xf32, #tpu.memory_space<vmem>>, %arg2: memref<2x128xf32, #tpu.memory_space<vmem>>) attributes {dimension_semantics = [], scalar_prefetch = 0 : i64, scratch_operands = 0 : i64, tpu.core_type = #tpu.core_type<tc>} {
    %c0 = arith.constant 0 : index
    %c0_0 = arith.constant 0 : index
    %0 = vector.load %arg1[%c0, %c0_0] : memref<48x128xf32, #tpu.memory_space<vmem>>, vector<4x128xf32>
    %1 = arith.truncf %0 : vector<4x128xf32> to vector<4x128xbf16>
    %c8 = arith.constant 8 : index
    %c0_1 = arith.constant 0 : index
    %2 = vector.load %arg1[%c8, %c0_1] : memref<48x128xf32, #tpu.memory_space<vmem>>, vector<32x128xf32>
    %3 = arith.truncf %2 : vector<32x128xf32> to vector<32x128xbf16>
    %c40 = arith.constant 40 : index
    %c0_2 = arith.constant 0 : index
    %4 = vector.load %arg1[%c40, %c0_2] : memref<48x128xf32, #tpu.memory_space<vmem>>, vector<8x128xf32>
    %5 = vector.extract_strided_slice %4 {offsets = [0, 0], sizes = [1, 128], strides = [1, 1]} : vector<8x128xf32> to vector<1x128xf32>
    %6 = vector.extract_strided_slice %4 {offsets = [1, 0], sizes = [1, 32], strides = [1, 1]} : vector<8x128xf32> to vector<1x32xf32>
    %7 = vector.extract_strided_slice %4 {offsets = [2, 0], sizes = [1, 128], strides = [1, 1]} : vector<8x128xf32> to vector<1x128xf32>
    %c0_3 = arith.constant 0 : index
    %c0_4 = arith.constant 0 : index
    %c0_5 = arith.constant 0 : index
    %8 = vector.load %arg0[%c0_3, %c0_4, %c0_5] : memref<2x8x4xf32, #tpu.memory_space<vmem>>, vector<2x8x4xf32>
    %9 = vector.shape_cast %8 : vector<2x8x4xf32> to vector<16x4xf32>
    %10 = arith.truncf %9 : vector<16x4xf32> to vector<16x4xbf16>
    %cst = arith.constant dense<0.000000e+00> : vector<16x128xf32>
    %11 = tpu.matmul %10, %1, %cst {dimension_numbers = #tpu.dot_dimension_numbers<[1], [0], [0], [1], [0, 0, 1, 1], [], []>} : vector<16x4xbf16>, vector<4x128xbf16>, vector<16x128xf32> -> vector<16x128xf32>
    %12 = vector.broadcast %5 : vector<1x128xf32> to vector<16x128xf32>
    %13 = arith.addf %11, %12 : vector<16x128xf32>
    %14 = vector.shape_cast %13 : vector<16x128xf32> to vector<2x8x128xf32>
    %cst_6 = arith.constant 0.000000e+00 : f32
    %15 = vector.broadcast %cst_6 : f32 to vector<2x32xf32>
    %cst_7 = arith.constant 0.000000e+00 : f32
    %16 = vector.broadcast %cst_7 : f32 to vector<2x32xf32>
    %17 = vector.extract_strided_slice %14 {offsets = [0, 0, 0], sizes = [2, 1, 128], strides = [1, 1, 1]} : vector<2x8x128xf32> to vector<2x1x128xf32>
    %18 = vector.shape_cast %17 : vector<2x1x128xf32> to vector<2x128xf32>
    %19 = arith.truncf %15 : vector<2x32xf32> to vector<2x32xbf16>
    %cst_8 = arith.constant dense<0.000000e+00> : vector<2x128xf32>
    %20 = tpu.matmul %19, %3, %cst_8 {dimension_numbers = #tpu.dot_dimension_numbers<[1], [0], [0], [1], [0, 0, 1, 1], [], []>} : vector<2x32xbf16>, vector<32x128xbf16>, vector<2x128xf32> -> vector<2x128xf32>
    %21 = arith.addf %18, %20 : vector<2x128xf32>
    %22 = arith.negf %21 : vector<2x128xf32>
    %23 = math.exp %22 : vector<2x128xf32>
    %cst_9 = arith.constant 1.000000e+00 : f32
    %24 = vector.broadcast %cst_9 : f32 to vector<2x128xf32>
    %25 = arith.addf %24, %23 : vector<2x128xf32>
    %26 = arith.divf %24, %25 : vector<2x128xf32>
    %27 = vector.extract_strided_slice %26 {offsets = [0, 0], sizes = [2, 32], strides = [1, 1]} : vector<2x128xf32> to vector<2x32xf32>
    %28 = vector.extract_strided_slice %26 {offsets = [0, 32], sizes = [2, 32], strides = [1, 1]} : vector<2x128xf32> to vector<2x32xf32>
    %29 = vector.extract_strided_slice %26 {offsets = [0, 64], sizes = [2, 32], strides = [1, 1]} : vector<2x128xf32> to vector<2x32xf32>
    %30 = vector.extract_strided_slice %26 {offsets = [0, 96], sizes = [2, 32], strides = [1, 1]} : vector<2x128xf32> to vector<2x32xf32>
    %cst_10 = arith.constant 2.000000e+00 : f32
    %31 = vector.broadcast %cst_10 : f32 to vector<2x32xf32>
    %32 = arith.mulf %31, %30 : vector<2x32xf32>
    %cst_11 = arith.constant 1.000000e+00 : f32
    %33 = vector.broadcast %cst_11 : f32 to vector<2x32xf32>
    %34 = arith.subf %32, %33 : vector<2x32xf32>
    %35 = arith.mulf %28, %16 : vector<2x32xf32>
    %36 = arith.mulf %27, %34 : vector<2x32xf32>
    %37 = arith.addf %35, %36 : vector<2x32xf32>
    %38 = math.tanh %37 : vector<2x32xf32>
    %39 = arith.mulf %29, %38 : vector<2x32xf32>
    %40 = vector.extract_strided_slice %14 {offsets = [0, 1, 0], sizes = [2, 1, 128], strides = [1, 1, 1]} : vector<2x8x128xf32> to vector<2x1x128xf32>
    %41 = vector.shape_cast %40 : vector<2x1x128xf32> to vector<2x128xf32>
    %42 = arith.truncf %39 : vector<2x32xf32> to vector<2x32xbf16>
    %cst_12 = arith.constant dense<0.000000e+00> : vector<2x128xf32>
    %43 = tpu.matmul %42, %3, %cst_12 {dimension_numbers = #tpu.dot_dimension_numbers<[1], [0], [0], [1], [0, 0, 1, 1], [], []>} : vector<2x32xbf16>, vector<32x128xbf16>, vector<2x128xf32> -> vector<2x128xf32>
    %44 = arith.addf %41, %43 : vector<2x128xf32>
    %45 = arith.negf %44 : vector<2x128xf32>
    %46 = math.exp %45 : vector<2x128xf32>
    %cst_13 = arith.constant 1.000000e+00 : f32
    %47 = vector.broadcast %cst_13 : f32 to vector<2x128xf32>
    %48 = arith.addf %47, %46 : vector<2x128xf32>
    %49 = arith.divf %47, %48 : vector<2x128xf32>
    %50 = vector.extract_strided_slice %49 {offsets = [0, 0], sizes = [2, 32], strides = [1, 1]} : vector<2x128xf32> to vector<2x32xf32>
    %51 = vector.extract_strided_slice %49 {offsets = [0, 32], sizes = [2, 32], strides = [1, 1]} : vector<2x128xf32> to vector<2x32xf32>
    %52 = vector.extract_strided_slice %49 {offsets = [0, 64], sizes = [2, 32], strides = [1, 1]} : vector<2x128xf32> to vector<2x32xf32>
    %53 = vector.extract_strided_slice %49 {offsets = [0, 96], sizes = [2, 32], strides = [1, 1]} : vector<2x128xf32> to vector<2x32xf32>
    %cst_14 = arith.constant 2.000000e+00 : f32
    %54 = vector.broadcast %cst_14 : f32 to vector<2x32xf32>
    %55 = arith.mulf %54, %53 : vector<2x32xf32>
    %cst_15 = arith.constant 1.000000e+00 : f32
    %56 = vector.broadcast %cst_15 : f32 to vector<2x32xf32>
    %57 = arith.subf %55, %56 : vector<2x32xf32>
    %58 = arith.mulf %51, %37 : vector<2x32xf32>
    %59 = arith.mulf %50, %57 : vector<2x32xf32>
    %60 = arith.addf %58, %59 : vector<2x32xf32>
    %61 = math.tanh %60 : vector<2x32xf32>
    %62 = arith.mulf %52, %61 : vector<2x32xf32>
    %63 = vector.extract_strided_slice %14 {offsets = [0, 2, 0], sizes = [2, 1, 128], strides = [1, 1, 1]} : vector<2x8x128xf32> to vector<2x1x128xf32>
    %64 = vector.shape_cast %63 : vector<2x1x128xf32> to vector<2x128xf32>
    %65 = arith.truncf %62 : vector<2x32xf32> to vector<2x32xbf16>
    %cst_16 = arith.constant dense<0.000000e+00> : vector<2x128xf32>
    %66 = tpu.matmul %65, %3, %cst_16 {dimension_numbers = #tpu.dot_dimension_numbers<[1], [0], [0], [1], [0, 0, 1, 1], [], []>} : vector<2x32xbf16>, vector<32x128xbf16>, vector<2x128xf32> -> vector<2x128xf32>
    %67 = arith.addf %64, %66 : vector<2x128xf32>
    %68 = arith.negf %67 : vector<2x128xf32>
    %69 = math.exp %68 : vector<2x128xf32>
    %cst_17 = arith.constant 1.000000e+00 : f32
    %70 = vector.broadcast %cst_17 : f32 to vector<2x128xf32>
    %71 = arith.addf %70, %69 : vector<2x128xf32>
    %72 = arith.divf %70, %71 : vector<2x128xf32>
    %73 = vector.extract_strided_slice %72 {offsets = [0, 0], sizes = [2, 32], strides = [1, 1]} : vector<2x128xf32> to vector<2x32xf32>
    %74 = vector.extract_strided_slice %72 {offsets = [0, 32], sizes = [2, 32], strides = [1, 1]} : vector<2x128xf32> to vector<2x32xf32>
    %75 = vector.extract_strided_slice %72 {offsets = [0, 64], sizes = [2, 32], strides = [1, 1]} : vector<2x128xf32> to vector<2x32xf32>
    %76 = vector.extract_strided_slice %72 {offsets = [0, 96], sizes = [2, 32], strides = [1, 1]} : vector<2x128xf32> to vector<2x32xf32>
    %cst_18 = arith.constant 2.000000e+00 : f32
    %77 = vector.broadcast %cst_18 : f32 to vector<2x32xf32>
    %78 = arith.mulf %77, %76 : vector<2x32xf32>
    %cst_19 = arith.constant 1.000000e+00 : f32
    %79 = vector.broadcast %cst_19 : f32 to vector<2x32xf32>
    %80 = arith.subf %78, %79 : vector<2x32xf32>
    %81 = arith.mulf %74, %60 : vector<2x32xf32>
    %82 = arith.mulf %73, %80 : vector<2x32xf32>
    %83 = arith.addf %81, %82 : vector<2x32xf32>
    %84 = math.tanh %83 : vector<2x32xf32>
    %85 = arith.mulf %75, %84 : vector<2x32xf32>
    %86 = vector.extract_strided_slice %14 {offsets = [0, 3, 0], sizes = [2, 1, 128], strides = [1, 1, 1]} : vector<2x8x128xf32> to vector<2x1x128xf32>
    %87 = vector.shape_cast %86 : vector<2x1x128xf32> to vector<2x128xf32>
    %88 = arith.truncf %85 : vector<2x32xf32> to vector<2x32xbf16>
    %cst_20 = arith.constant dense<0.000000e+00> : vector<2x128xf32>
    %89 = tpu.matmul %88, %3, %cst_20 {dimension_numbers = #tpu.dot_dimension_numbers<[1], [0], [0], [1], [0, 0, 1, 1], [], []>} : vector<2x32xbf16>, vector<32x128xbf16>, vector<2x128xf32> -> vector<2x128xf32>
    %90 = arith.addf %87, %89 : vector<2x128xf32>
    %91 = arith.negf %90 : vector<2x128xf32>
    %92 = math.exp %91 : vector<2x128xf32>
    %cst_21 = arith.constant 1.000000e+00 : f32
    %93 = vector.broadcast %cst_21 : f32 to vector<2x128xf32>
    %94 = arith.addf %93, %92 : vector<2x128xf32>
    %95 = arith.divf %93, %94 : vector<2x128xf32>
    %96 = vector.extract_strided_slice %95 {offsets = [0, 0], sizes = [2, 32], strides = [1, 1]} : vector<2x128xf32> to vector<2x32xf32>
    %97 = vector.extract_strided_slice %95 {offsets = [0, 32], sizes = [2, 32], strides = [1, 1]} : vector<2x128xf32> to vector<2x32xf32>
    %98 = vector.extract_strided_slice %95 {offsets = [0, 64], sizes = [2, 32], strides = [1, 1]} : vector<2x128xf32> to vector<2x32xf32>
    %99 = vector.extract_strided_slice %95 {offsets = [0, 96], sizes = [2, 32], strides = [1, 1]} : vector<2x128xf32> to vector<2x32xf32>
    %cst_22 = arith.constant 2.000000e+00 : f32
    %100 = vector.broadcast %cst_22 : f32 to vector<2x32xf32>
    %101 = arith.mulf %100, %99 : vector<2x32xf32>
    %cst_23 = arith.constant 1.000000e+00 : f32
    %102 = vector.broadcast %cst_23 : f32 to vector<2x32xf32>
    %103 = arith.subf %101, %102 : vector<2x32xf32>
    %104 = arith.mulf %97, %83 : vector<2x32xf32>
    %105 = arith.mulf %96, %103 : vector<2x32xf32>
    %106 = arith.addf %104, %105 : vector<2x32xf32>
    %107 = math.tanh %106 : vector<2x32xf32>
    %108 = arith.mulf %98, %107 : vector<2x32xf32>
    %109 = vector.extract_strided_slice %14 {offsets = [0, 4, 0], sizes = [2, 1, 128], strides = [1, 1, 1]} : vector<2x8x128xf32> to vector<2x1x128xf32>
    %110 = vector.shape_cast %109 : vector<2x1x128xf32> to vector<2x128xf32>
    %111 = arith.truncf %108 : vector<2x32xf32> to vector<2x32xbf16>
    %cst_24 = arith.constant dense<0.000000e+00> : vector<2x128xf32>
    %112 = tpu.matmul %111, %3, %cst_24 {dimension_numbers = #tpu.dot_dimension_numbers<[1], [0], [0], [1], [0, 0, 1, 1], [], []>} : vector<2x32xbf16>, vector<32x128xbf16>, vector<2x128xf32> -> vector<2x128xf32>
    %113 = arith.addf %110, %112 : vector<2x128xf32>
    %114 = arith.negf %113 : vector<2x128xf32>
    %115 = math.exp %114 : vector<2x128xf32>
    %cst_25 = arith.constant 1.000000e+00 : f32
    %116 = vector.broadcast %cst_25 : f32 to vector<2x128xf32>
    %117 = arith.addf %116, %115 : vector<2x128xf32>
    %118 = arith.divf %116, %117 : vector<2x128xf32>
    %119 = vector.extract_strided_slice %118 {offsets = [0, 0], sizes = [2, 32], strides = [1, 1]} : vector<2x128xf32> to vector<2x32xf32>
    %120 = vector.extract_strided_slice %118 {offsets = [0, 32], sizes = [2, 32], strides = [1, 1]} : vector<2x128xf32> to vector<2x32xf32>
    %121 = vector.extract_strided_slice %118 {offsets = [0, 64], sizes = [2, 32], strides = [1, 1]} : vector<2x128xf32> to vector<2x32xf32>
    %122 = vector.extract_strided_slice %118 {offsets = [0, 96], sizes = [2, 32], strides = [1, 1]} : vector<2x128xf32> to vector<2x32xf32>
    %cst_26 = arith.constant 2.000000e+00 : f32
    %123 = vector.broadcast %cst_26 : f32 to vector<2x32xf32>
    %124 = arith.mulf %123, %122 : vector<2x32xf32>
    %cst_27 = arith.constant 1.000000e+00 : f32
    %125 = vector.broadcast %cst_27 : f32 to vector<2x32xf32>
    %126 = arith.subf %124, %125 : vector<2x32xf32>
    %127 = arith.mulf %120, %106 : vector<2x32xf32>
    %128 = arith.mulf %119, %126 : vector<2x32xf32>
    %129 = arith.addf %127, %128 : vector<2x32xf32>
    %130 = math.tanh %129 : vector<2x32xf32>
    %131 = arith.mulf %121, %130 : vector<2x32xf32>
    %132 = vector.extract_strided_slice %14 {offsets = [0, 5, 0], sizes = [2, 1, 128], strides = [1, 1, 1]} : vector<2x8x128xf32> to vector<2x1x128xf32>
    %133 = vector.shape_cast %132 : vector<2x1x128xf32> to vector<2x128xf32>
    %134 = arith.truncf %131 : vector<2x32xf32> to vector<2x32xbf16>
    %cst_28 = arith.constant dense<0.000000e+00> : vector<2x128xf32>
    %135 = tpu.matmul %134, %3, %cst_28 {dimension_numbers = #tpu.dot_dimension_numbers<[1], [0], [0], [1], [0, 0, 1, 1], [], []>} : vector<2x32xbf16>, vector<32x128xbf16>, vector<2x128xf32> -> vector<2x128xf32>
    %136 = arith.addf %133, %135 : vector<2x128xf32>
    %137 = arith.negf %136 : vector<2x128xf32>
    %138 = math.exp %137 : vector<2x128xf32>
    %cst_29 = arith.constant 1.000000e+00 : f32
    %139 = vector.broadcast %cst_29 : f32 to vector<2x128xf32>
    %140 = arith.addf %139, %138 : vector<2x128xf32>
    %141 = arith.divf %139, %140 : vector<2x128xf32>
    %142 = vector.extract_strided_slice %141 {offsets = [0, 0], sizes = [2, 32], strides = [1, 1]} : vector<2x128xf32> to vector<2x32xf32>
    %143 = vector.extract_strided_slice %141 {offsets = [0, 32], sizes = [2, 32], strides = [1, 1]} : vector<2x128xf32> to vector<2x32xf32>
    %144 = vector.extract_strided_slice %141 {offsets = [0, 64], sizes = [2, 32], strides = [1, 1]} : vector<2x128xf32> to vector<2x32xf32>
    %145 = vector.extract_strided_slice %141 {offsets = [0, 96], sizes = [2, 32], strides = [1, 1]} : vector<2x128xf32> to vector<2x32xf32>
    %cst_30 = arith.constant 2.000000e+00 : f32
    %146 = vector.broadcast %cst_30 : f32 to vector<2x32xf32>
    %147 = arith.mulf %146, %145 : vector<2x32xf32>
    %cst_31 = arith.constant 1.000000e+00 : f32
    %148 = vector.broadcast %cst_31 : f32 to vector<2x32xf32>
    %149 = arith.subf %147, %148 : vector<2x32xf32>
    %150 = arith.mulf %143, %129 : vector<2x32xf32>
    %151 = arith.mulf %142, %149 : vector<2x32xf32>
    %152 = arith.addf %150, %151 : vector<2x32xf32>
    %153 = math.tanh %152 : vector<2x32xf32>
    %154 = arith.mulf %144, %153 : vector<2x32xf32>
    %155 = vector.extract_strided_slice %14 {offsets = [0, 6, 0], sizes = [2, 1, 128], strides = [1, 1, 1]} : vector<2x8x128xf32> to vector<2x1x128xf32>
    %156 = vector.shape_cast %155 : vector<2x1x128xf32> to vector<2x128xf32>
    %157 = arith.truncf %154 : vector<2x32xf32> to vector<2x32xbf16>
    %cst_32 = arith.constant dense<0.000000e+00> : vector<2x128xf32>
    %158 = tpu.matmul %157, %3, %cst_32 {dimension_numbers = #tpu.dot_dimension_numbers<[1], [0], [0], [1], [0, 0, 1, 1], [], []>} : vector<2x32xbf16>, vector<32x128xbf16>, vector<2x128xf32> -> vector<2x128xf32>
    %159 = arith.addf %156, %158 : vector<2x128xf32>
    %160 = arith.negf %159 : vector<2x128xf32>
    %161 = math.exp %160 : vector<2x128xf32>
    %cst_33 = arith.constant 1.000000e+00 : f32
    %162 = vector.broadcast %cst_33 : f32 to vector<2x128xf32>
    %163 = arith.addf %162, %161 : vector<2x128xf32>
    %164 = arith.divf %162, %163 : vector<2x128xf32>
    %165 = vector.extract_strided_slice %164 {offsets = [0, 0], sizes = [2, 32], strides = [1, 1]} : vector<2x128xf32> to vector<2x32xf32>
    %166 = vector.extract_strided_slice %164 {offsets = [0, 32], sizes = [2, 32], strides = [1, 1]} : vector<2x128xf32> to vector<2x32xf32>
    %167 = vector.extract_strided_slice %164 {offsets = [0, 64], sizes = [2, 32], strides = [1, 1]} : vector<2x128xf32> to vector<2x32xf32>
    %168 = vector.extract_strided_slice %164 {offsets = [0, 96], sizes = [2, 32], strides = [1, 1]} : vector<2x128xf32> to vector<2x32xf32>
    %cst_34 = arith.constant 2.000000e+00 : f32
    %169 = vector.broadcast %cst_34 : f32 to vector<2x32xf32>
    %170 = arith.mulf %169, %168 : vector<2x32xf32>
    %cst_35 = arith.constant 1.000000e+00 : f32
    %171 = vector.broadcast %cst_35 : f32 to vector<2x32xf32>
    %172 = arith.subf %170, %171 : vector<2x32xf32>
    %173 = arith.mulf %166, %152 : vector<2x32xf32>
    %174 = arith.mulf %165, %172 : vector<2x32xf32>
    %175 = arith.addf %173, %174 : vector<2x32xf32>
    %176 = math.tanh %175 : vector<2x32xf32>
    %177 = arith.mulf %167, %176 : vector<2x32xf32>
    %178 = vector.extract_strided_slice %14 {offsets = [0, 7, 0], sizes = [2, 1, 128], strides = [1, 1, 1]} : vector<2x8x128xf32> to vector<2x1x128xf32>
    %179 = vector.shape_cast %178 : vector<2x1x128xf32> to vector<2x128xf32>
    %180 = arith.truncf %177 : vector<2x32xf32> to vector<2x32xbf16>
    %cst_36 = arith.constant dense<0.000000e+00> : vector<2x128xf32>
    %181 = tpu.matmul %180, %3, %cst_36 {dimension_numbers = #tpu.dot_dimension_numbers<[1], [0], [0], [1], [0, 0, 1, 1], [], []>} : vector<2x32xbf16>, vector<32x128xbf16>, vector<2x128xf32> -> vector<2x128xf32>
    %182 = arith.addf %179, %181 : vector<2x128xf32>
    %183 = arith.negf %182 : vector<2x128xf32>
    %184 = math.exp %183 : vector<2x128xf32>
    %cst_37 = arith.constant 1.000000e+00 : f32
    %185 = vector.broadcast %cst_37 : f32 to vector<2x128xf32>
    %186 = arith.addf %185, %184 : vector<2x128xf32>
    %187 = arith.divf %185, %186 : vector<2x128xf32>
    %188 = vector.extract_strided_slice %187 {offsets = [0, 0], sizes = [2, 32], strides = [1, 1]} : vector<2x128xf32> to vector<2x32xf32>
    %189 = vector.extract_strided_slice %187 {offsets = [0, 32], sizes = [2, 32], strides = [1, 1]} : vector<2x128xf32> to vector<2x32xf32>
    %190 = vector.extract_strided_slice %187 {offsets = [0, 64], sizes = [2, 32], strides = [1, 1]} : vector<2x128xf32> to vector<2x32xf32>
    %191 = vector.extract_strided_slice %187 {offsets = [0, 96], sizes = [2, 32], strides = [1, 1]} : vector<2x128xf32> to vector<2x32xf32>
    %cst_38 = arith.constant 2.000000e+00 : f32
    %192 = vector.broadcast %cst_38 : f32 to vector<2x32xf32>
    %193 = arith.mulf %192, %191 : vector<2x32xf32>
    %cst_39 = arith.constant 1.000000e+00 : f32
    %194 = vector.broadcast %cst_39 : f32 to vector<2x32xf32>
    %195 = arith.subf %193, %194 : vector<2x32xf32>
    %196 = arith.mulf %189, %175 : vector<2x32xf32>
    %197 = arith.mulf %188, %195 : vector<2x32xf32>
    %198 = arith.addf %196, %197 : vector<2x32xf32>
    %199 = math.tanh %198 : vector<2x32xf32>
    %200 = arith.mulf %190, %199 : vector<2x32xf32>
    %201 = vector.broadcast %6 : vector<1x32xf32> to vector<2x32xf32>
    %202 = arith.mulf %200, %201 : vector<2x32xf32>
    %cst_40 = arith.constant dense<0.000000e+00> : vector<2xf32>
    %203 = vector.multi_reduction <add>, %202, %cst_40 [1] : vector<2x32xf32> to vector<2xf32>
    %204 = vector.shape_cast %203 : vector<2xf32> to vector<2x1xf32>
    %205 = vector.broadcast %204 : vector<2x1xf32> to vector<2x128xf32>
    %206 = vector.broadcast %7 : vector<1x128xf32> to vector<2x128xf32>
    %207 = arith.addf %205, %206 : vector<2x128xf32>
    %208 = arith.negf %207 : vector<2x128xf32>
    %209 = math.exp %208 : vector<2x128xf32>
    %cst_41 = arith.constant 1.000000e+00 : f32
    %210 = vector.broadcast %cst_41 : f32 to vector<2x128xf32>
    %211 = arith.addf %210, %209 : vector<2x128xf32>
    %212 = arith.divf %210, %211 : vector<2x128xf32>
    %c0_42 = arith.constant 0 : index
    %c0_43 = arith.constant 0 : index
    %213 = vector.load %arg2[%c0_42, %c0_43] : memref<2x128xf32, #tpu.memory_space<vmem>>, vector<2x128xf32>
    tpu.vector_store %arg2[%c0_42, %c0_43], %212 {strides = array<i32>} : memref<2x128xf32, #tpu.memory_space<vmem>>, vector<2x128xf32>,
    return
  }
}

</mosaic_0001>

<bundles_post_ra>
// kernel: trend_predictor_forward.1
= control target key start
LH: loop header
LB: loop body
LE: loop exit
PB: predicated region body
PF: predicated region fallthrough
CT: control target
= control target key end

     0   :  { %7 = vsyncpa [#allocation3], 0  ;;  %s1342_s9 = smov [#allocation2]   ;;  %s1565_s0 = inlined_call_operand.vmem [shape: f32[2,8,4], index: 0, kind: input, shape index: {}]   ;;  %s1566_s1 = inlined_call_operand.hbm [shape: f32[48,128], index: 1, kind: input, shape index: {}]   ;;  %s1567_s2 = inlined_call_operand.vmem [shape: f32[2,128], index: 2, kind: output, shape index: {}]  }
   0x1   :  { %s15_s10 = sshll.u32 %s1342_s9, 4  ;;  %s1318_s13 = scalar_lea.hbm %s1566_s1, 768  ;;  %s16_s10 = int_to_ptr.vmem [resolvable:$true] %s15_s10 }
   0x2   :  { %p1319_p0 = scmp.ne.s32.totalorder %s1566_s1, %s1318_s13  ;;  %p1322_p1 = scmp.lt.u32.totalorder %s1318_s13, %s1566_s1 }
   0x4   :  { %p1324_p2 = pnand %p1322_p1, %p1319_p0 }
   0x6   :  { %1327 = shalt.err (!%p1324_p2)
}
   0x7   :  { %s1328_s18 = scalar_lea.vmem %s16_s10, 768  ;;  %p1333_p4 = scmp.lt.s32.totalorder %s16_s10, %s16_s10 }
   0x8   :  { %p1329_p3 = scmp.ne.s32.totalorder %s16_s10, %s1328_s18  ;;  %p1334_p5 = scmp.lt.s32.totalorder %s1328_s18, %s1328_s18 }
   0xa   :  { %p1335_p6 = por %p1334_p5, %p1333_p4 }
   0xc   :  { %p1336_p7 = pnand %p1335_p6, %p1329_p3 }
   0xe   :  { %1339 = shalt.err (!%p1336_p7)
}
   0xf   :  { %s1343_s19 = smov 128   ;;  %s1344_s20 = smov 8  }
  0x10   :  { %21 = dma.hbm_to_vmem [thread:$0]  %s1566_s1, 768, %s16_s10, [#allocation3], %s1343_s19, %s1343_s19, %s1344_s20  }
  0x11   :  { %1340 = dma.done.wait [#allocation3], 768  }
  0x12   :  { %1341 = vsyncadd [#allocation3], 4294966528  ;;  %v1345_v0 = vmov 0.0   ;;  %vm1346_vm0 = vmmov 0   ;;  %v28_v1 = vld [vmem:[#allocation2 + $0x8] sm:$0xff]  ;;  %v29_v2 = vld [vmem:[#allocation2 + $0x10] sm:$0xff]  ;;  %v38_v14 = vlaneseq }
  0x13   :  { %1141 = vmatprep.subr.bf16.mxu1 %v1345_v0  ;;  %1135 = vmatprep.subr.bf16.mxu0 %v1345_v0  ;;  %v26_v3 = vld [vmem:[#allocation2] sm:$0xf]  ;;  %vm46_vm1 = vcmask 1041408   ;;  %v1383_v4 = vpack.c.bf16 %v29_v2, %v28_v1  ;;  %v36_v7 = vld [vmem:[%s1565_s0 + $0x8] sm:$0xff]  ;;  %v30_v8 = vld [vmem:[#allocation2 + $0x18] sm:$0xff]  ;;  %vm42_vm2 = vcmask 31744  }
  0x14   :  { %1137 = vmatprep.mubr.msk.bf16.mxu0 %vm1346_vm0, %v1345_v0  ;;  %1145 = vmatprep.mubr.msk.bf16.mxu1 %vm1346_vm0, %v1345_v0  ;;  %v27_v5 = vpack.c.bf16 %v26_v3, %v26_v3  ;;  %v35_v6 = vld [vmem:[%s1565_s0] sm:$0xff]  ;;  %v1347_v13 = vmov 0   ;;  %v1410_v15 = vshrl.u32 %v38_v14, 7  ;;  %v1413_v17 = vld [vmem:[#allocation2 + $0x28] sm:$0xff]  ;;  %s1348_s0 = smov 32   ;;  %vm198_vm3 = vcmask 1041409  }
  0x15   :  { %v31_v9 = vld [vmem:[#allocation2 + $0x20] sm:$0xff]  ;;  %1142 = vmatpush3.bf16.msra.mxu1 %v1383_v4  ;;  %v37_v11 = vpack.c.bf16 %v36_v7, %v35_v6  ;;  %s1349_s26 = smov 64   ;;  %vm91_vm4 = vcmask 261120   ;;  %vm1034_vm5 = vcmask 261127   ;;  %vm1038_vm6 = vcmask 253952  }
  0x16   :  { %v48_v10 = vsel %vm46_vm1, %v27_v5, 0  ;;  %v1392_v12 = vpack.c.bf16 %v31_v9, %v30_v8  ;;  %1143 = vmatprep.subr.bf16.mxu1 %v1345_v0  ;;  %v40_v16 = vsub.s32 0, %v1410_v15 }
  0x17   :  { %1136 = vmatpush3.bf16.msra.mxu0 %v48_v10 }
  0x18   :  { %1149 = vmatprep.subr.bf16.mxu0 %v1345_v0  ;;  %v41_v18 = vrot.slane %v1413_v17, %v40_v16 }
  0x19   :  { %1144 = vmatpush3.bf16.msra.mxu1 %v1392_v12 }
  0x1a   :  { %1138 = vmatmul.mubr.msk.bf16.vlgmr.msra.gmra.mrb[0].mxu0 %vm42_vm2, %v37_v11  ;;  %1157 = vmatprep.subr.bf16.mxu1 %v1345_v0 }
  0x1b   :  { %1150 = vmatpush3.bf16.msra.mxu0 %v1383_v4  ;;  %1153 = vmatprep.mubr.msk.bf16.mxu0 %vm1346_vm0, %v1345_v0 }
  0x1c   :  { %1151 = vmatprep.subr.bf16.mxu0 %v1345_v0  ;;  %1146 = vmatmul.mubr.bf16.vlgmr.msra.gmra.mrb[0].mxu1 %v1347_v13 }
  0x1d   :  { %1158 = vmatpush3.bf16.msra.mxu1 %v1383_v4  ;;  %1161 = vmatprep.mubr.msk.bf16.mxu1 %vm1346_vm0, %v1345_v0 }
  0x1e   :  { %1159 = vmatprep.subr.bf16.mxu1 %v1345_v0 }
  0x1f   :  { %1152 = vmatpush3.bf16.msra.mxu0 %v1392_v12 }
  0x20   :  { %1165 = vmatprep.subr.bf16.mxu0 %v1345_v0 }
  0x21   :  { %1160 = vmatpush3.bf16.msra.mxu1 %v1392_v12 }
  0x22   :  { %1173 = vmatprep.subr.bf16.mxu1 %v1345_v0 }
  0xed   :  { %v84_v19 = vpop.f32.mrb[0].mxu0 }
  0xee   :  { %v1416_v20 = vadd.f32 %v84_v19, %v41_v18  ;;  %v1139_v21 = vpop.f32.mrb[1].mxu0 }
  0xef   :  { %v87_v22 = vpop.f32.mrb[2].mxu0  ;;  %v129_v25 = vpop.f32.mrb[0].mxu1 }
  0xf0   :  { %v1418_v23 = vadd.f32 %v87_v22, %v41_v18  ;;  %v1140_v24 = vpop.f32.mrb[3].mxu0  ;;  %v136_v26 = vrot.slane %v129_v25, 1  ;;  %v139_v27 = vadd.f32 %v129_v25, %v1416_v20  ;;  %v1147_v28 = vpop.f32.mrb[1].mxu1 }
  0xf1   :  { %v132_v29 = vpop.f32.mrb[2].mxu1 }
  0xf2   :  { %v140_v30 = vadd.f32 %v136_v26, %v1418_v23  ;;  %v1068_v31 = vmul.f32 -1.442695, %v139_v27  ;;  %v1148_v32 = vpop.f32.mrb[3].mxu1 }
  0xf4   :  { %1213 = vpow2.f32 %v1068_v31  ;;  %v1069_v33 = vmul.f32 -1.442695, %v140_v30 }
  0xf6   :  { %1215 = vpow2.f32 %v1069_v33 }
  0xfe   :  { %v1214_v34 = vpop.eup %1213 }
  0xff   :  { %v147_v35 = vadd.f32 1.0, %v1214_v34 }
 0x100   :  { %v1216_v36 = vpop.eup %1215 }
 0x101   :  { %v148_v37 = vadd.f32 1.0, %v1216_v36  ;;  %1217 = vrcp.f32 %v147_v35 }
 0x103   :  { %1219 = vrcp.f32 %v148_v37 }
 0x10b   :  { %v1218_v38 = vpop.eup %1217 }
 0x10c   :  { %v153_v42 = vmul.f32 2.0, %v1218_v38  ;;  %v157_v51 = vmul.f32 0.0, %v1218_v38 }
 0x10d   :  { %v1220_v39 = vpop.eup %1219 }
 0x10e   :  { %v154_v40 = vmul.f32 2.0, %v1220_v39  ;;  %v1070_v43 = vadd.f32 -1.0, %v153_v42  ;;  %v158_v48 = vmul.f32 0.0, %v1220_v39 }
 0x110   :  { %v1071_v41 = vadd.f32 -1.0, %v154_v40 }
 0x112   :  { %163 = vrot.lane.b32.xlu0 %v1071_v41, %s1348_s0 }
 0x116   :  { %161 = vrot.lane.b32.xlu0 %v1070_v43, %s1348_s0 }
 0x184   :  { %v164_v44 = vpop.permute.xlu0 %163 }
 0x185   :  { %v168_v45 = vmul.f32 %v1220_v39, %v164_v44 }
 0x187   :  { %173 = vrot.lane.b32.xlu1 %v168_v45, %s1348_s0 }
 0x188   :  { %v162_v46 = vpop.permute.xlu0 %161 }
 0x189   :  { %v167_v47 = vmul.f32 %v1218_v38, %v162_v46 }
 0x18b   :  { %171 = vrot.lane.b32.xlu1 %v167_v47, %s1348_s0 }
 0x1f9   :  { %v174_v49 = vpop.permute.xlu1 %173 }
 0x1fa   :  { %v1426_v50 = vadd.f32 %v174_v49, %v158_v48 }
 0x1fc   :  { %1221 = vtanh.f32 %v1426_v50  ;;  %v271_v34 = vrot.slane %v1426_v50, 7 }
 0x1fd   :  { %v172_v52 = vpop.permute.xlu1 %171 }
 0x1fe   :  { %v1429_v53 = vadd.f32 %v172_v52, %v157_v51 }
 0x200   :  { %1223 = vtanh.f32 %v1429_v53  ;;  %v270_v35 = vrot.slane %v1429_v53, 7 }
 0x206   :  { %v1222_v54 = vpop.eup %1221 }
 0x207   :  { %185 = vrot.lane.b32.xlu0 %v1222_v54, %s1348_s0 }
 0x20a   :  { %v1224_v55 = vpop.eup %1223 }
 0x20b   :  { %183 = vrot.lane.b32.xlu1 %v1224_v55, %s1348_s0 }
 0x279   :  { %v186_v56 = vpop.permute.xlu0 %185 }
 0x27a   :  { %v190_v57 = vmul.f32 %v1220_v39, %v186_v56 }
 0x27c   :  { %v192_v58 = vpack.c.bf16 %v190_v57, %v190_v57 }
 0x27d   :  { %v184_v59 = vpop.permute.xlu1 %183 }
 0x27e   :  { %v196_v60 = vunpack.c.l.b16 %v192_v58  ;;  %v189_v61 = vmul.f32 %v1218_v38, %v184_v59 }
 0x280   :  { %v191_v62 = vpack.c.bf16 %v189_v61, %v189_v61  ;;  %v197_v63 = vrot.slane %v196_v60, 7 }
 0x282   :  { %v195_v1 = vunpack.c.l.b16 %v191_v62 }
 0x284   :  { %v199_v2 = vsel %vm198_vm3, %v197_v63, %v195_v1 }
 0x285   :  { %v200_v3 = vpack.c.b16 %v199_v2, %v199_v2 }
 0x287   :  { %201 = vrot.lane.b32.xlu0 %v200_v3, %s1349_s26 }
 0x2f9   :  { %v202_v5 = vpop.permute.xlu0 %201 }
 0x2fa   :  { %1154 = vmatmul.mubr.msk.bf16.vlgmr.msra.gmra.mrb[4].mxu0 %vm91_vm4, %v202_v5 }
 0x2fb   :  { %1166 = vmatpush3.bf16.msra.mxu0 %v1383_v4  ;;  %1169 = vmatprep.mubr.msk.bf16.mxu0 %vm1346_vm0, %v1345_v0 }
 0x2fc   :  { %1167 = vmatprep.subr.bf16.mxu0 %v1345_v0 }
 0x2ff   :  { %1168 = vmatpush3.bf16.msra.mxu0 %v1392_v12 }
 0x300   :  { %1181 = vmatprep.subr.bf16.mxu0 %v1345_v0 }
 0x3cd   :  { %v240_v6 = vpop.f32.mrb[4].mxu0 }
 0x3ce   :  { %v247_v7 = vrot.slane %v240_v6, 7  ;;  %v251_v8 = vadd.f32 %v240_v6, %v1418_v23  ;;  %v1155_v9 = vpop.f32.mrb[5].mxu0 }
 0x3cf   :  { %v243_v10 = vpop.f32.mrb[6].mxu0 }
 0x3d0   :  { %v250_v11 = vadd.f32 %v247_v7, %v1416_v20  ;;  %v1074_v13 = vmul.f32 -1.442695, %v251_v8  ;;  %v1156_v14 = vpop.f32.mrb[7].mxu0 }
 0x3d2   :  { %v1073_v16 = vmul.f32 -1.442695, %v250_v11  ;;  %1225 = vpow2.f32 %v1074_v13 }
 0x3d4   :  { %1227 = vpow2.f32 %v1073_v16 }
 0x3dc   :  { %v1226_v18 = vpop.eup %1225 }
 0x3dd   :  { %v259_v19 = vadd.f32 1.0, %v1226_v18 }
 0x3de   :  { %v1228_v21 = vpop.eup %1227 }
 0x3df   :  { %v258_v22 = vadd.f32 1.0, %v1228_v21  ;;  %1229 = vrcp.f32 %v259_v19 }
 0x3e1   :  { %1231 = vrcp.f32 %v258_v22 }
 0x3e9   :  { %v1230_v24 = vpop.eup %1229 }
 0x3ea   :  { %v265_v25 = vmul.f32 2.0, %v1230_v24  ;;  %v275_v36 = vmul.f32 %v1230_v24, %v271_v34 }
 0x3eb   :  { %v1232_v26 = vpop.eup %1231 }
 0x3ec   :  { %v1076_v27 = vadd.f32 -1.0, %v265_v25  ;;  %v264_v28 = vmul.f32 2.0, %v1232_v26  ;;  %v274_v39 = vmul.f32 %v1232_v26, %v270_v35 }
 0x3ee   :  { %280 = vrot.lane.b32.xlu0 %v1076_v27, %s1348_s0  ;;  %v1075_v29 = vadd.f32 -1.0, %v264_v28 }
 0x3f0   :  { %278 = vrot.lane.b32.xlu1 %v1075_v29, %s1348_s0 }
 0x460   :  { %v281_v30 = vpop.permute.xlu0 %280 }
 0x461   :  { %v285_v31 = vmul.f32 %v1230_v24, %v281_v30 }
 0x462   :  { %v279_v32 = vpop.permute.xlu1 %278 }
 0x463   :  { %v284_v33 = vmul.f32 %v1232_v26, %v279_v32  ;;  %290 = vrot.lane.b32.xlu0 %v285_v31, %s1348_s0 }
 0x465   :  { %288 = vrot.lane.b32.xlu1 %v284_v33, %s1348_s0 }
 0x4d5   :  { %v291_v37 = vpop.permute.xlu0 %290 }
 0x4d6   :  { %v1451_v38 = vadd.f32 %v291_v37, %v275_v36 }
 0x4d7   :  { %v289_v40 = vpop.permute.xlu1 %288 }
 0x4d8   :  { %1233 = vtanh.f32 %v1451_v38  ;;  %v294_v41 = vadd.f32 %v289_v40, %v274_v39 }
 0x4da   :  { %1235 = vtanh.f32 %v294_v41  ;;  %v387_v22 = vrot.slane %v294_v41, 7 }
 0x4e2   :  { %v1234_v42 = vpop.eup %1233 }
 0x4e3   :  { %302 = vrot.lane.b32.xlu0 %v1234_v42, %s1348_s0 }
 0x4e4   :  { %v1236_v43 = vpop.eup %1235 }
 0x4e5   :  { %300 = vrot.lane.b32.xlu1 %v1236_v43, %s1348_s0 }
 0x555   :  { %v303_v44 = vpop.permute.xlu0 %302 }
 0x556   :  { %v307_v45 = vmul.f32 %v1230_v24, %v303_v44  ;;  %v388_v24 = vrot.slane %v1451_v38, 7 }
 0x557   :  { %v301_v46 = vpop.permute.xlu1 %300 }
 0x558   :  { %v306_v47 = vmul.f32 %v1232_v26, %v301_v46  ;;  %v309_v48 = vpack.c.bf16 %v307_v45, %v307_v45 }
 0x55a   :  { %v308_v49 = vpack.c.bf16 %v306_v47, %v306_v47  ;;  %v313_v51 = vunpack.c.l.b16 %v309_v48 }
 0x55c   :  { %v312_v50 = vunpack.c.l.b16 %v308_v49 }
 0x55e   :  { %v314_v52 = vrot.slane %v312_v50, 1 }
 0x560   :  { %v315_v53 = vsel %vm198_vm3, %v313_v51, %v314_v52 }
 0x561   :  { %v316_v54 = vpack.c.b16 %v315_v53, %v315_v53 }
 0x563   :  { %317 = vrot.lane.b32.xlu1 %v316_v54, %s1349_s26 }
 0x5d5   :  { %v318_v55 = vpop.permute.xlu1 %317 }
 0x5d6   :  { %1162 = vmatmul.mubr.msk.bf16.vlgmr.msra.gmra.mrb[4].mxu1 %vm91_vm4, %v318_v55 }
 0x5d7   :  { %1174 = vmatpush3.bf16.msra.mxu1 %v1383_v4  ;;  %1177 = vmatprep.mubr.msk.bf16.mxu1 %vm1346_vm0, %v1345_v0 }
 0x5d8   :  { %1175 = vmatprep.subr.bf16.mxu1 %v1345_v0 }
 0x5db   :  { %1176 = vmatpush3.bf16.msra.mxu1 %v1392_v12 }
 0x5dc   :  { %1189 = vmatprep.subr.bf16.mxu1 %v1345_v0 }
 0x6a9   :  { %v356_v56 = vpop.f32.mrb[4].mxu1 }
 0x6aa   :  { %v363_v57 = vrot.slane %v356_v56, 6  ;;  %v364_v58 = vrot.slane %v356_v56, 7  ;;  %v1163_v59 = vpop.f32.mrb[5].mxu1 }
 0x6ab   :  { %v359_v60 = vpop.f32.mrb[6].mxu1 }
 0x6ac   :  { %v367_v61 = vadd.f32 %v363_v57, %v1416_v20  ;;  %v368_v62 = vadd.f32 %v364_v58, %v1418_v23  ;;  %v1164_v63 = vpop.f32.mrb[7].mxu1 }
 0x6ae   :  { %v1078_v1 = vmul.f32 -1.442695, %v367_v61  ;;  %v1079_v2 = vmul.f32 -1.442695, %v368_v62 }
 0x6b0   :  { %1237 = vpow2.f32 %v1078_v1 }
 0x6b1   :  { %1239 = vpow2.f32 %v1079_v2 }
 0x6ba   :  { %v1238_v3 = vpop.eup %1237 }
 0x6bb   :  { %v1240_v5 = vpop.eup %1239  ;;  %v375_v6 = vadd.f32 1.0, %v1238_v3 }
 0x6bc   :  { %v376_v7 = vadd.f32 1.0, %v1240_v5 }
 0x6bd   :  { %1241 = vrcp.f32 %v375_v6 }
 0x6be   :  { %1243 = vrcp.f32 %v376_v7 }
 0x6c7   :  { %v1242_v8 = vpop.eup %1241 }
 0x6c8   :  { %v1244_v9 = vpop.eup %1243  ;;  %v381_v10 = vmul.f32 2.0, %v1242_v8  ;;  %v391_v25 = vmul.f32 %v1242_v8, %v387_v22 }
 0x6c9   :  { %v382_v11 = vmul.f32 2.0, %v1244_v9  ;;  %v392_v26 = vmul.f32 %v1244_v9, %v388_v24 }
 0x6ca   :  { %v1080_v13 = vadd.f32 -1.0, %v381_v10 }
 0x6cb   :  { %v1081_v14 = vadd.f32 -1.0, %v382_v11 }
 0x6cc   :  { %395 = vrot.lane.b32.xlu0 %v1080_v13, %s1348_s0 }
 0x6cd   :  { %397 = vrot.lane.b32.xlu1 %v1081_v14, %s1348_s0 }
 0x73e   :  { %v396_v16 = vpop.permute.xlu0 %395 }
 0x73f   :  { %v398_v18 = vpop.permute.xlu1 %397  ;;  %v401_v19 = vmul.f32 %v1242_v8, %v396_v16 }
 0x740   :  { %v402_v21 = vmul.f32 %v1244_v9, %v398_v18 }
 0x741   :  { %405 = vrot.lane.b32.xlu0 %v401_v19, %s1348_s0 }
 0x742   :  { %407 = vrot.lane.b32.xlu1 %v402_v21, %s1348_s0 }
 0x7b3   :  { %v406_v27 = vpop.permute.xlu0 %405 }
 0x7b4   :  { %v408_v28 = vpop.permute.xlu1 %407  ;;  %v1472_v29 = vadd.f32 %v406_v27, %v391_v25 }
 0x7b5   :  { %v1474_v30 = vadd.f32 %v408_v28, %v392_v26 }
 0x7b6   :  { %1245 = vtanh.f32 %v1472_v29 }
 0x7b7   :  { %1247 = vtanh.f32 %v1474_v30 }
 0x7c0   :  { %v1246_v31 = vpop.eup %1245 }
 0x7c1   :  { %v1248_v32 = vpop.eup %1247  ;;  %417 = vrot.lane.b32.xlu0 %v1246_v31, %s1348_s0 }
 0x7c2   :  { %419 = vrot.lane.b32.xlu1 %v1248_v32, %s1348_s0 }
 0x833   :  { %v418_v33 = vpop.permute.xlu0 %417 }
 0x834   :  { %v420_v34 = vpop.permute.xlu1 %419  ;;  %v423_v35 = vmul.f32 %v1242_v8, %v418_v33  ;;  %v505_v8 = vrot.slane %v1472_v29, 7 }
 0x835   :  { %v424_v36 = vmul.f32 %v1244_v9, %v420_v34  ;;  %v506_v9 = vrot.slane %v1474_v30, 7 }
 0x836   :  { %v425_v37 = vpack.c.bf16 %v423_v35, %v423_v35 }
 0x837   :  { %v426_v38 = vpack.c.bf16 %v424_v36, %v424_v36 }
 0x838   :  { %v429_v39 = vunpack.c.l.b16 %v425_v37 }
 0x839   :  { %v430_v40 = vunpack.c.l.b16 %v426_v38 }
 0x83a   :  { %v431_v41 = vrot.slane %v429_v39, 2 }
 0x83b   :  { %v432_v42 = vrot.slane %v430_v40, 1 }
 0x83d   :  { %v433_v43 = vsel %vm198_vm3, %v432_v42, %v431_v41 }
 0x83e   :  { %v434_v44 = vpack.c.b16 %v433_v43, %v433_v43 }
 0x840   :  { %435 = vrot.lane.b32.xlu0 %v434_v44, %s1349_s26 }
 0x8b2   :  { %v436_v45 = vpop.permute.xlu0 %435 }
 0x8b3   :  { %1170 = vmatmul.mubr.msk.bf16.vlgmr.msra.gmra.mrb[8].mxu0 %vm91_vm4, %v436_v45 }
 0x8b4   :  { %1182 = vmatpush3.bf16.msra.mxu0 %v1383_v4  ;;  %1185 = vmatprep.mubr.msk.bf16.mxu0 %vm1346_vm0, %v1345_v0 }
 0x8b5   :  { %1183 = vmatprep.subr.bf16.mxu0 %v1345_v0 }
 0x8b8   :  { %1184 = vmatpush3.bf16.msra.mxu0 %v1392_v12 }
 0x8b9   :  { %1197 = vmatprep.subr.bf16.mxu0 %v1345_v0 }
 0x986   :  { %v474_v46 = vpop.f32.mrb[8].mxu0 }
 0x987   :  { %v481_v47 = vrot.slane %v474_v46, 5  ;;  %v482_v48 = vrot.slane %v474_v46, 6  ;;  %v1171_v49 = vpop.f32.mrb[9].mxu0 }
 0x988   :  { %v477_v50 = vpop.f32.mrb[10].mxu0 }
 0x989   :  { %v485_v51 = vadd.f32 %v481_v47, %v1416_v20  ;;  %v486_v52 = vadd.f32 %v482_v48, %v1418_v23  ;;  %v1172_v53 = vpop.f32.mrb[11].mxu0 }
 0x98b   :  { %v1083_v54 = vmul.f32 -1.442695, %v485_v51  ;;  %v1084_v55 = vmul.f32 -1.442695, %v486_v52 }
 0x98d   :  { %1249 = vpow2.f32 %v1083_v54 }
 0x98e   :  { %1251 = vpow2.f32 %v1084_v55 }
 0x997   :  { %v1250_v56 = vpop.eup %1249 }
 0x998   :  { %v1252_v57 = vpop.eup %1251  ;;  %v493_v58 = vadd.f32 1.0, %v1250_v56 }
 0x999   :  { %v494_v59 = vadd.f32 1.0, %v1252_v57 }
 0x99a   :  { %1253 = vrcp.f32 %v493_v58 }
 0x99b   :  { %1255 = vrcp.f32 %v494_v59 }
 0x9a4   :  { %v1254_v60 = vpop.eup %1253 }
 0x9a5   :  { %v1256_v61 = vpop.eup %1255  ;;  %v499_v62 = vmul.f32 2.0, %v1254_v60  ;;  %v509_v10 = vmul.f32 %v1254_v60, %v505_v8 }
 0x9a6   :  { %v500_v63 = vmul.f32 2.0, %v1256_v61  ;;  %v510_v11 = vmul.f32 %v1256_v61, %v506_v9 }
 0x9a7   :  { %v1085_v1 = vadd.f32 -1.0, %v499_v62 }
 0x9a8   :  { %v1086_v2 = vadd.f32 -1.0, %v500_v63 }
 0x9a9   :  { %513 = vrot.lane.b32.xlu1 %v1085_v1, %s1348_s0 }
 0x9aa   :  { %515 = vrot.lane.b32.xlu0 %v1086_v2, %s1348_s0 }
 0xa1b   :  { %v514_v3 = vpop.permute.xlu1 %513 }
 0xa1c   :  { %v516_v5 = vpop.permute.xlu0 %515  ;;  %v519_v6 = vmul.f32 %v1254_v60, %v514_v3 }
 0xa1d   :  { %v520_v7 = vmul.f32 %v1256_v61, %v516_v5 }
 0xa1e   :  { %523 = vrot.lane.b32.xlu1 %v519_v6, %s1348_s0 }
 0xa1f   :  { %525 = vrot.lane.b32.xlu0 %v520_v7, %s1348_s0 }
 0xa90   :  { %v524_v13 = vpop.permute.xlu1 %523 }
 0xa91   :  { %v526_v14 = vpop.permute.xlu0 %525  ;;  %v529_v16 = vadd.f32 %v524_v13, %v509_v10 }
 0xa92   :  { %v530_v18 = vadd.f32 %v526_v14, %v510_v11 }
 0xa93   :  { %1257 = vtanh.f32 %v529_v16 }
 0xa94   :  { %1259 = vtanh.f32 %v530_v18 }
 0xa9d   :  { %v1258_v19 = vpop.eup %1257 }
 0xa9e   :  { %v1260_v21 = vpop.eup %1259  ;;  %535 = vrot.lane.b32.xlu1 %v1258_v19, %s1348_s0 }
 0xa9f   :  { %537 = vrot.lane.b32.xlu0 %v1260_v21, %s1348_s0 }
 0xb10   :  { %v536_v22 = vpop.permute.xlu1 %535 }
 0xb11   :  { %v538_v24 = vpop.permute.xlu0 %537  ;;  %v541_v25 = vmul.f32 %v1254_v60, %v536_v22  ;;  %v623_v60 = vrot.slane %v529_v16, 7 }
 0xb12   :  { %v542_v26 = vmul.f32 %v1256_v61, %v538_v24  ;;  %v624_v61 = vrot.slane %v530_v18, 7 }
 0xb13   :  { %v543_v27 = vpack.c.bf16 %v541_v25, %v541_v25 }
 0xb14   :  { %v544_v28 = vpack.c.bf16 %v542_v26, %v542_v26 }
 0xb15   :  { %v547_v29 = vunpack.c.l.b16 %v543_v27 }
 0xb16   :  { %v548_v30 = vunpack.c.l.b16 %v544_v28 }
 0xb17   :  { %v549_v31 = vrot.slane %v547_v29, 3 }
 0xb18   :  { %v550_v32 = vrot.slane %v548_v30, 2 }
 0xb1a   :  { %v551_v33 = vsel %vm198_vm3, %v550_v32, %v549_v31 }
 0xb1b   :  { %v552_v34 = vpack.c.b16 %v551_v33, %v551_v33 }
 0xb1d   :  { %553 = vrot.lane.b32.xlu1 %v552_v34, %s1349_s26 }
 0xb8f   :  { %v554_v35 = vpop.permute.xlu1 %553 }
 0xb90   :  { %1178 = vmatmul.mubr.msk.bf16.vlgmr.msra.gmra.mrb[8].mxu1 %vm91_vm4, %v554_v35 }
 0xb91   :  { %1190 = vmatpush3.bf16.msra.mxu1 %v1383_v4  ;;  %1193 = vmatprep.mubr.msk.bf16.mxu1 %vm1346_vm0, %v1345_v0 }
 0xb92   :  { %1191 = vmatprep.subr.bf16.mxu1 %v1345_v0 }
 0xb95   :  { %1192 = vmatpush3.bf16.msra.mxu1 %v1392_v12 }
 0xc63   :  { %v592_v36 = vpop.f32.mrb[8].mxu1 }
 0xc64   :  { %v599_v37 = vrot.slane %v592_v36, 4  ;;  %v600_v38 = vrot.slane %v592_v36, 5  ;;  %v1179_v39 = vpop.f32.mrb[9].mxu1 }
 0xc65   :  { %v595_v40 = vpop.f32.mrb[10].mxu1 }
 0xc66   :  { %v603_v41 = vadd.f32 %v599_v37, %v1416_v20  ;;  %v604_v42 = vadd.f32 %v600_v38, %v1418_v23  ;;  %v1180_v43 = vpop.f32.mrb[11].mxu1 }
 0xc68   :  { %v1088_v44 = vmul.f32 -1.442695, %v603_v41  ;;  %v1089_v45 = vmul.f32 -1.442695, %v604_v42 }
 0xc6a   :  { %1261 = vpow2.f32 %v1088_v44 }
 0xc6b   :  { %1263 = vpow2.f32 %v1089_v45 }
 0xc74   :  { %v1262_v46 = vpop.eup %1261 }
 0xc75   :  { %v1264_v47 = vpop.eup %1263  ;;  %v611_v48 = vadd.f32 1.0, %v1262_v46 }
 0xc76   :  { %v612_v49 = vadd.f32 1.0, %v1264_v47 }
 0xc77   :  { %1265 = vrcp.f32 %v611_v48 }
 0xc78   :  { %1267 = vrcp.f32 %v612_v49 }
 0xc81   :  { %v1266_v50 = vpop.eup %1265 }
 0xc82   :  { %v1268_v51 = vpop.eup %1267  ;;  %v617_v52 = vmul.f32 2.0, %v1266_v50  ;;  %v627_v62 = vmul.f32 %v1266_v50, %v623_v60 }
 0xc83   :  { %v618_v53 = vmul.f32 2.0, %v1268_v51  ;;  %v628_v63 = vmul.f32 %v1268_v51, %v624_v61 }
 0xc84   :  { %v1090_v54 = vadd.f32 -1.0, %v617_v52 }
 0xc85   :  { %v1091_v55 = vadd.f32 -1.0, %v618_v53 }
 0xc86   :  { %631 = vrot.lane.b32.xlu0 %v1090_v54, %s1348_s0 }
 0xc87   :  { %633 = vrot.lane.b32.xlu1 %v1091_v55, %s1348_s0 }
 0xcf8   :  { %v632_v56 = vpop.permute.xlu0 %631 }
 0xcf9   :  { %v634_v57 = vpop.permute.xlu1 %633  ;;  %v637_v58 = vmul.f32 %v1266_v50, %v632_v56 }
 0xcfa   :  { %v638_v59 = vmul.f32 %v1268_v51, %v634_v57 }
 0xcfb   :  { %641 = vrot.lane.b32.xlu0 %v637_v58, %s1348_s0 }
 0xcfc   :  { %643 = vrot.lane.b32.xlu1 %v638_v59, %s1348_s0 }
 0xd6d   :  { %v642_v1 = vpop.permute.xlu0 %641 }
 0xd6e   :  { %v644_v2 = vpop.permute.xlu1 %643  ;;  %v647_v3 = vadd.f32 %v642_v1, %v627_v62 }
 0xd6f   :  { %v648_v5 = vadd.f32 %v644_v2, %v628_v63 }
 0xd70   :  { %1269 = vtanh.f32 %v647_v3  ;;  %v741_v47 = vrot.slane %v647_v3, 7 }
 0xd71   :  { %1271 = vtanh.f32 %v648_v5  ;;  %v742_v48 = vrot.slane %v648_v5, 7 }
 0xd7a   :  { %v1270_v6 = vpop.eup %1269 }
 0xd7b   :  { %v1272_v7 = vpop.eup %1271  ;;  %653 = vrot.lane.b32.xlu0 %v1270_v6, %s1348_s0 }
 0xd7c   :  { %655 = vrot.lane.b32.xlu1 %v1272_v7, %s1348_s0 }
 0xded   :  { %v654_v8 = vpop.permute.xlu0 %653 }
 0xdee   :  { %v656_v9 = vpop.permute.xlu1 %655  ;;  %v659_v10 = vmul.f32 %v1266_v50, %v654_v8 }
 0xdef   :  { %v660_v11 = vmul.f32 %v1268_v51, %v656_v9 }
 0xdf0   :  { %v661_v13 = vpack.c.bf16 %v659_v10, %v659_v10 }
 0xdf1   :  { %v662_v14 = vpack.c.bf16 %v660_v11, %v660_v11 }
 0xdf2   :  { %v665_v16 = vunpack.c.l.b16 %v661_v13 }
 0xdf3   :  { %v666_v18 = vunpack.c.l.b16 %v662_v14 }
 0xdf4   :  { %v667_v19 = vrot.slane %v665_v16, 4 }
 0xdf5   :  { %v668_v21 = vrot.slane %v666_v18, 3 }
 0xdf7   :  { %v669_v22 = vsel %vm198_vm3, %v668_v21, %v667_v19 }
 0xdf8   :  { %v670_v24 = vpack.c.b16 %v669_v22, %v669_v22 }
 0xdfa   :  { %671 = vrot.lane.b32.xlu0 %v670_v24, %s1349_s26 }
 0xe6c   :  { %v672_v25 = vpop.permute.xlu0 %671 }
 0xe6d   :  { %1186 = vmatmul.mubr.msk.bf16.vlgmr.msra.gmra.mrb[12].mxu0 %vm91_vm4, %v672_v25 }
 0xe6e   :  { %1198 = vmatpush3.bf16.msra.mxu0 %v1383_v4  ;;  %1201 = vmatprep.mubr.msk.bf16.mxu0 %vm1346_vm0, %v1345_v0 }
 0xe6f   :  { %1199 = vmatprep.subr.bf16.mxu0 %v1345_v0 }
 0xe72   :  { %1200 = vmatpush3.bf16.msra.mxu0 %v1392_v12 }
 0xf40   :  { %v710_v26 = vpop.f32.mrb[12].mxu0 }
 0xf41   :  { %v717_v27 = vrot.slane %v710_v26, 3  ;;  %v718_v28 = vrot.slane %v710_v26, 4  ;;  %v1187_v29 = vpop.f32.mrb[13].mxu0 }
 0xf42   :  { %v713_v30 = vpop.f32.mrb[14].mxu0 }
 0xf43   :  { %v721_v31 = vadd.f32 %v717_v27, %v1416_v20  ;;  %v722_v32 = vadd.f32 %v718_v28, %v1418_v23  ;;  %v1188_v33 = vpop.f32.mrb[15].mxu0 }
 0xf45   :  { %v1093_v34 = vmul.f32 -1.442695, %v721_v31  ;;  %v1094_v35 = vmul.f32 -1.442695, %v722_v32 }
 0xf47   :  { %1273 = vpow2.f32 %v1093_v34 }
 0xf48   :  { %1275 = vpow2.f32 %v1094_v35 }
 0xf51   :  { %v1274_v4 = vpop.eup %1273 }
 0xf52   :  { %v1276_v36 = vpop.eup %1275  ;;  %v729_v37 = vadd.f32 1.0, %v1274_v4 }
 0xf53   :  { %v730_v0 = vadd.f32 1.0, %v1276_v36 }
 0xf54   :  { %1277 = vrcp.f32 %v729_v37 }
 0xf55   :  { %1279 = vrcp.f32 %v730_v0 }
 0xf5e   :  { %v1278_v12 = vpop.eup %1277 }
 0xf5f   :  { %v1280_v38 = vpop.eup %1279  ;;  %v735_v39 = vmul.f32 2.0, %v1278_v12  ;;  %v745_v49 = vmul.f32 %v1278_v12, %v741_v47 }
 0xf60   :  { %v736_v40 = vmul.f32 2.0, %v1280_v38  ;;  %v746_v50 = vmul.f32 %v1280_v38, %v742_v48 }
 0xf61   :  { %v1095_v41 = vadd.f32 -1.0, %v735_v39 }
 0xf62   :  { %v1096_v42 = vadd.f32 -1.0, %v736_v40 }
 0xf63   :  { %749 = vrot.lane.b32.xlu1 %v1095_v41, %s1348_s0 }
 0xf64   :  { %751 = vrot.lane.b32.xlu0 %v1096_v42, %s1348_s0 }
 0xfd5   :  { %v750_v43 = vpop.permute.xlu1 %749 }
 0xfd6   :  { %v752_v44 = vpop.permute.xlu0 %751  ;;  %v755_v45 = vmul.f32 %v1278_v12, %v750_v43 }
 0xfd7   :  { %v756_v46 = vmul.f32 %v1280_v38, %v752_v44 }
 0xfd8   :  { %759 = vrot.lane.b32.xlu1 %v755_v45, %s1348_s0 }
 0xfd9   :  { %761 = vrot.lane.b32.xlu0 %v756_v46, %s1348_s0 }
0x104a   :  { %v760_v51 = vpop.permute.xlu1 %759 }
0x104b   :  { %v762_v52 = vpop.permute.xlu0 %761  ;;  %v765_v53 = vadd.f32 %v760_v51, %v745_v49 }
0x104c   :  { %v766_v54 = vadd.f32 %v762_v52, %v746_v50 }
0x104d   :  { %1281 = vtanh.f32 %v765_v53  ;;  %v859_v36 = vrot.slane %v765_v53, 7 }
0x104e   :  { %1283 = vtanh.f32 %v766_v54  ;;  %v860_v37 = vrot.slane %v766_v54, 7 }
0x1057   :  { %v1282_v55 = vpop.eup %1281 }
0x1058   :  { %v1284_v56 = vpop.eup %1283  ;;  %771 = vrot.lane.b32.xlu1 %v1282_v55, %s1348_s0 }
0x1059   :  { %773 = vrot.lane.b32.xlu0 %v1284_v56, %s1348_s0 }
0x10ca   :  { %v772_v57 = vpop.permute.xlu1 %771 }
0x10cb   :  { %v774_v58 = vpop.permute.xlu0 %773  ;;  %v777_v59 = vmul.f32 %v1278_v12, %v772_v57 }
0x10cc   :  { %v778_v60 = vmul.f32 %v1280_v38, %v774_v58 }
0x10cd   :  { %v779_v61 = vpack.c.bf16 %v777_v59, %v777_v59 }
0x10ce   :  { %v780_v62 = vpack.c.bf16 %v778_v60, %v778_v60 }
0x10cf   :  { %v783_v63 = vunpack.c.l.b16 %v779_v61 }
0x10d0   :  { %v784_v1 = vunpack.c.l.b16 %v780_v62 }
0x10d1   :  { %v785_v2 = vrot.slane %v783_v63, 5 }
0x10d2   :  { %v786_v3 = vrot.slane %v784_v1, 4 }
0x10d4   :  { %v787_v5 = vsel %vm198_vm3, %v786_v3, %v785_v2 }
0x10d5   :  { %v788_v6 = vpack.c.b16 %v787_v5, %v787_v5 }
0x10d7   :  { %789 = vrot.lane.b32.xlu1 %v788_v6, %s1349_s26 }
0x1149   :  { %v790_v7 = vpop.permute.xlu1 %789 }
0x114a   :  { %1194 = vmatmul.mubr.msk.bf16.vlgmr.msra.gmra.mrb[12].mxu1 %vm91_vm4, %v790_v7 }
0x121d   :  { %v828_v8 = vpop.f32.mrb[12].mxu1 }
0x121e   :  { %v835_v9 = vrot.slane %v828_v8, 2  ;;  %v836_v10 = vrot.slane %v828_v8, 3  ;;  %v1195_v11 = vpop.f32.mrb[13].mxu1 }
0x121f   :  { %v831_v13 = vpop.f32.mrb[14].mxu1 }
0x1220   :  { %v839_v14 = vadd.f32 %v835_v9, %v1416_v20  ;;  %v840_v16 = vadd.f32 %v836_v10, %v1418_v23  ;;  %v1196_v18 = vpop.f32.mrb[15].mxu1 }
0x1222   :  { %v1098_v19 = vmul.f32 -1.442695, %v839_v14  ;;  %v1099_v21 = vmul.f32 -1.442695, %v840_v16 }
0x1224   :  { %1285 = vpow2.f32 %v1098_v19 }
0x1225   :  { %1287 = vpow2.f32 %v1099_v21 }
0x122e   :  { %v1286_v22 = vpop.eup %1285 }
0x122f   :  { %v1288_v24 = vpop.eup %1287  ;;  %v847_v25 = vadd.f32 1.0, %v1286_v22 }
0x1230   :  { %v848_v26 = vadd.f32 1.0, %v1288_v24 }
0x1231   :  { %1289 = vrcp.f32 %v847_v25 }
0x1232   :  { %1291 = vrcp.f32 %v848_v26 }
0x123b   :  { %v1290_v27 = vpop.eup %1289 }
0x123c   :  { %v1292_v28 = vpop.eup %1291  ;;  %v853_v29 = vmul.f32 2.0, %v1290_v27  ;;  %v863_v0 = vmul.f32 %v1290_v27, %v859_v36 }
0x123d   :  { %v854_v30 = vmul.f32 2.0, %v1292_v28  ;;  %v864_v12 = vmul.f32 %v1292_v28, %v860_v37 }
0x123e   :  { %v1100_v31 = vadd.f32 -1.0, %v853_v29 }
0x123f   :  { %v1101_v32 = vadd.f32 -1.0, %v854_v30  ;;  %v1017_v30 = vsub.s32 1, %v1410_v15 }
0x1240   :  { %867 = vrot.lane.b32.xlu0 %v1100_v31, %s1348_s0 }
0x1241   :  { %869 = vrot.lane.b32.xlu1 %v1101_v32, %s1348_s0 }
0x12b2   :  { %v868_v33 = vpop.permute.xlu0 %867 }
0x12b3   :  { %v870_v34 = vpop.permute.xlu1 %869  ;;  %v873_v35 = vmul.f32 %v1290_v27, %v868_v33  ;;  %v1018_v33 = vrot.slane %v1413_v17, %v1017_v30 }
0x12b4   :  { %v874_v4 = vmul.f32 %v1292_v28, %v870_v34 }
0x12b5   :  { %877 = vrot.lane.b32.xlu0 %v873_v35, %s1348_s0 }
0x12b6   :  { %879 = vrot.lane.b32.xlu1 %v874_v4, %s1348_s0 }
0x1327   :  { %v878_v38 = vpop.permute.xlu0 %877 }
0x1328   :  { %v880_v39 = vpop.permute.xlu1 %879  ;;  %v883_v40 = vadd.f32 %v878_v38, %v863_v0 }
0x1329   :  { %v884_v41 = vadd.f32 %v880_v39, %v864_v12 }
0x132a   :  { %1293 = vtanh.f32 %v883_v40  ;;  %v977_v21 = vrot.slane %v883_v40, 7 }
0x132b   :  { %1295 = vtanh.f32 %v884_v41  ;;  %v978_v22 = vrot.slane %v884_v41, 7 }
0x1334   :  { %v1294_v42 = vpop.eup %1293 }
0x1335   :  { %v1296_v43 = vpop.eup %1295  ;;  %889 = vrot.lane.b32.xlu0 %v1294_v42, %s1348_s0  ;;  %v1044_v42 = vsub.s32 2, %v1410_v15 }
0x1336   :  { %891 = vrot.lane.b32.xlu1 %v1296_v43, %s1348_s0  ;;  %v1317_v43 = vld [vmem:[#allocation2 + $0x28] sm:$0xff] }
0x13a7   :  { %v890_v44 = vpop.permute.xlu0 %889 }
0x13a8   :  { %v892_v45 = vpop.permute.xlu1 %891  ;;  %v895_v46 = vmul.f32 %v1290_v27, %v890_v44  ;;  %v1045_v44 = vrot.slane %v1317_v43, %v1044_v42 }
0x13a9   :  { %v896_v47 = vmul.f32 %v1292_v28, %v892_v45 }
0x13aa   :  { %v897_v48 = vpack.c.bf16 %v895_v46, %v895_v46 }
0x13ab   :  { %v898_v49 = vpack.c.bf16 %v896_v47, %v896_v47 }
0x13ac   :  { %v901_v50 = vunpack.c.l.b16 %v897_v48 }
0x13ad   :  { %v902_v51 = vunpack.c.l.b16 %v898_v49 }
0x13ae   :  { %v903_v52 = vrot.slane %v901_v50, 6 }
0x13af   :  { %v904_v53 = vrot.slane %v902_v51, 5 }
0x13b1   :  { %v905_v54 = vsel %vm198_vm3, %v904_v53, %v903_v52 }
0x13b2   :  { %v906_v55 = vpack.c.b16 %v905_v54, %v905_v54 }
0x13b4   :  { %907 = vrot.lane.b32.xlu0 %v906_v55, %s1349_s26 }
0x1426   :  { %v908_v56 = vpop.permute.xlu0 %907 }
0x1427   :  { %1202 = vmatmul.mubr.msk.bf16.vlgmr.msra.gmra.mrb[16].mxu0 %vm91_vm4, %v908_v56 }
0x14fa   :  { %v946_v57 = vpop.f32.mrb[16].mxu0 }
0x14fb   :  { %v953_v58 = vrot.slane %v946_v57, 1  ;;  %v954_v59 = vrot.slane %v946_v57, 2  ;;  %v1203_v60 = vpop.f32.mrb[17].mxu0 }
0x14fc   :  { %v949_v61 = vpop.f32.mrb[18].mxu0 }
0x14fd   :  { %v957_v62 = vadd.f32 %v953_v58, %v1416_v20  ;;  %v958_v63 = vadd.f32 %v954_v59, %v1418_v23  ;;  %v1204_v1 = vpop.f32.mrb[19].mxu0 }
0x14ff   :  { %v1103_v2 = vmul.f32 -1.442695, %v957_v62  ;;  %v1104_v3 = vmul.f32 -1.442695, %v958_v63 }
0x1501   :  { %1297 = vpow2.f32 %v1103_v2 }
0x1502   :  { %1299 = vpow2.f32 %v1104_v3 }
0x150b   :  { %v1298_v5 = vpop.eup %1297 }
0x150c   :  { %v1300_v6 = vpop.eup %1299  ;;  %v965_v7 = vadd.f32 1.0, %v1298_v5 }
0x150d   :  { %v966_v8 = vadd.f32 1.0, %v1300_v6 }
0x150e   :  { %1301 = vrcp.f32 %v965_v7 }
0x150f   :  { %1303 = vrcp.f32 %v966_v8 }
0x1518   :  { %v1302_v9 = vpop.eup %1301 }
0x1519   :  { %v1304_v10 = vpop.eup %1303  ;;  %v971_v11 = vmul.f32 2.0, %v1302_v9  ;;  %v981_v24 = vmul.f32 %v1302_v9, %v977_v21 }
0x151a   :  { %v972_v13 = vmul.f32 2.0, %v1304_v10  ;;  %v982_v25 = vmul.f32 %v1304_v10, %v978_v22 }
0x151b   :  { %v1105_v14 = vadd.f32 -1.0, %v971_v11 }
0x151c   :  { %v1106_v16 = vadd.f32 -1.0, %v972_v13 }
0x151d   :  { %985 = vrot.lane.b32.xlu0 %v1105_v14, %s1348_s0 }
0x151e   :  { %987 = vrot.lane.b32.xlu1 %v1106_v16, %s1348_s0 }
0x158f   :  { %v986_v20 = vpop.permute.xlu0 %985 }
0x1590   :  { %v988_v23 = vpop.permute.xlu1 %987  ;;  %v991_v18 = vmul.f32 %v1302_v9, %v986_v20 }
0x1591   :  { %v992_v19 = vmul.f32 %v1304_v10, %v988_v23 }
0x1592   :  { %995 = vrot.lane.b32.xlu0 %v991_v18, %s1348_s0 }
0x1593   :  { %997 = vrot.lane.b32.xlu1 %v992_v19, %s1348_s0 }
0x1604   :  { %v996_v26 = vpop.permute.xlu0 %995 }
0x1605   :  { %v998_v27 = vpop.permute.xlu1 %997  ;;  %v1001_v28 = vadd.f32 %v996_v26, %v981_v24 }
0x1606   :  { %v1002_v29 = vadd.f32 %v998_v27, %v982_v25 }
0x1607   :  { %1305 = vtanh.f32 %v1001_v28 }
0x1608   :  { %1307 = vtanh.f32 %v1002_v29 }
0x1611   :  { %v1306_v31 = vpop.eup %1305 }
0x1612   :  { %v1308_v32 = vpop.eup %1307  ;;  %1007 = vrot.lane.b32.xlu0 %v1306_v31, %s1348_s0 }
0x1613   :  { %1009 = vrot.lane.b32.xlu1 %v1308_v32, %s1348_s0 }
0x1617   :  { %1020 = vrot.lane.b32.xlu1 %v1018_v33, %s1349_s26 }
0x1684   :  { %v1008_v35 = vpop.permute.xlu0 %1007 }
0x1685   :  { %v1010_v34 = vpop.permute.xlu1 %1009  ;;  %v1013_v36 = vmul.f32 %v1302_v9, %v1008_v35 }
0x1686   :  { %v1014_v4 = vmul.f32 %v1304_v10, %v1010_v34 }
0x1689   :  { %v1021_v37 = vpop.permute.xlu1 %1020 }
0x168a   :  { %v1023_v0 = vmul.f32 %v1021_v37, %v1013_v36  ;;  %v1024_v12 = vmul.f32 %v1021_v37, %v1014_v4 }
0x168c   :  { %v1027_v38 = vrot.slane %v1024_v12, 7  ;;  %1028 = vrot.lane.b32.xlu0 %v1023_v0, %s1349_s26 }
0x168e   :  { %1030 = vrot.lane.b32.xlu1 %v1027_v38, %s1349_s26 }
0x16fe   :  { %v1029_v39 = vpop.permute.xlu0 %1028 }
0x16ff   :  { %v1035_v40 = vsel %vm1034_vm5, %v1029_v39, 0.0 }
0x1700   :  { %v1031_v41 = vpop.permute.xlu1 %1030  ;;  %1036 = vadd.xlane.f32.xlu0 %v1035_v40 }
0x1701   :  { %v1039_v17 = vsel %vm1038_vm6, %v1031_v41, 0.0 }
0x1702   :  { %1040 = vadd.xlane.f32.xlu1 %v1039_v17 }
0x178d   :  { %v1037_v45 = vpop.xlane.xlu0 %1036 }
0x178e   :  { %v1046_v46 = vadd.f32 %v1045_v44, %v1037_v45 }
0x178f   :  { %v1041_v47 = vpop.xlane.xlu1 %1040 }
0x1790   :  { %v1107_v48 = vmul.f32 -1.442695, %v1046_v46  ;;  %v1047_v49 = vadd.f32 %v1045_v44, %v1041_v47 }
0x1792   :  { %1309 = vpow2.f32 %v1107_v48  ;;  %v1108_v50 = vmul.f32 -1.442695, %v1047_v49 }
0x1794   :  { %1311 = vpow2.f32 %v1108_v50 }
0x179c   :  { %v1310_v51 = vpop.eup %1309 }
0x179d   :  { %v1054_v52 = vadd.f32 1.0, %v1310_v51 }
0x179e   :  { %v1312_v53 = vpop.eup %1311 }
0x179f   :  { %1313 = vrcp.f32 %v1054_v52  ;;  %v1055_v54 = vadd.f32 1.0, %v1312_v53 }
0x17a1   :  { %1315 = vrcp.f32 %v1055_v54 }
0x17a9   :  { %v1314_v55 = vpop.eup %1313 }
0x17aa   :  { %1060 = vst [vmem:[%s1567_s2 - $0x7] sm:$0x80] %v1314_v55 }
0x17ab   :  { %v1316_v15 = vpop.eup %1315 }
0x17ac   :  { %1061 = vst [vmem:[%s1567_s2 + $0x1] sm:$0x1] %v1316_v15 }
0x17ad   :  { %1066 = vsyncpa [#allocation3], 1 }

</bundles_post_ra>
